<compile_context>
chip_gen: v5e
topology: v5e:2x2
jax: 0.10.0
libtpu: 0.0.40
codegen_flags: <defaults>
</compile_context>

<pallas_src>
import functools
import math

import jax
import jax.numpy as jnp
from jax.experimental import pallas as pl
from jax.experimental.pallas import tpu as pltpu


def _erf_poly(x):
    # Abramowitz & Stegun 7.1.26 (|error| <= 1.5e-7): keeps nn.GELU()'s exact
    # erf semantics to f32 noise without depending on a lax.erf Mosaic lowering.
    a1, a2, a3, a4, a5 = (0.254829592, -0.284496736, 1.421413741,
                          -1.453152027, 1.061405429)
    p = 0.3275911
    ax = jnp.abs(x)
    t = 1.0 / (1.0 + p * ax)
    poly = ((((a5 * t + a4) * t + a3) * t + a2) * t + a1) * t
    y = 1.0 - poly * jnp.exp(-ax * ax)
    return jnp.where(x >= 0.0, y, -y)


def _gelu_exact(x):
    # PyTorch nn.GELU() default: exact erf formulation (kept in f32).
    return 0.5 * x * (1.0 + _erf_poly(x * (1.0 / math.sqrt(2.0))))


# ---------------------------------------------------------------------------
# Kernel 1: fused QKV projection with a resident packed weight.
# grid = (batch, seq-tiles); one (Ts, D) @ (D, 3D) MXU matmul per step.
# ---------------------------------------------------------------------------
def _qkv_proj_kernel(x_ref, w_ref, q_ref, k_ref, v_ref, *, dim):
    qkv = jnp.dot(x_ref[...], w_ref[...], preferred_element_type=jnp.float32)
    q_ref[...] = qkv[:, 0 * dim:1 * dim].astype(q_ref.dtype)
    k_ref[...] = qkv[:, 1 * dim:2 * dim].astype(k_ref.dtype)
    v_ref[...] = qkv[:, 2 * dim:3 * dim].astype(v_ref.dtype)


# ---------------------------------------------------------------------------
# Kernel 2: flash attention over packed head groups + fused output projection
# + AdapterEraser.  grid = (batch, q-tiles, head-groups, kv-tiles); the group
# and kv axes are reduction axes carried in VMEM scratch.
# ---------------------------------------------------------------------------
def _flash_eraser_kernel(
    q_ref, k_ref, v_ref, wo_ref, bo_ref, wd_ref, bd_ref, wu_ref, bu_ref,
    o_ref, m_sc, l_sc, acc_sc, oproj_sc,
    *, sm_scale, heads_per_group, head_dim,
):
    g, kv = pl.program_id(2), pl.program_id(3)
    n_g, n_kv = pl.num_programs(2), pl.num_programs(3)

    @pl.when(jnp.logical_and(g == 0, kv == 0))
    def _():
        oproj_sc[...] = jnp.zeros(oproj_sc.shape, oproj_sc.dtype)

    @pl.when(kv == 0)
    def _():
        m_sc[...] = jnp.full(m_sc.shape, -jnp.inf, m_sc.dtype)
        l_sc[...] = jnp.zeros(l_sc.shape, l_sc.dtype)
        acc_sc[...] = jnp.zeros(acc_sc.shape, acc_sc.dtype)

    # Lane-dense loads of the whole packed head group (G*hd lanes).
    q_grp = q_ref[...]                                   # (Tq, G*hd) native dtype
    k_grp = k_ref[...]                                   # (Tk, G*hd)
    v_grp = v_ref[...]                                   # (Tk, G*hd)

    hd = head_dim
    # TODO(synk): block-diagonal packing would give a full-width MXU contraction
    # here; static per-head lane slices keep everything 2-D and simple.
    for i in range(heads_per_group):
        sl = slice(i * hd, (i + 1) * hd)
        qh = q_grp[:, sl] * sm_scale
        kh = k_grp[:, sl]
        s = jnp.dot(qh, kh.T, preferred_element_type=jnp.float32)    # (Tq, Tk)
        m_prev = m_sc[i]
        m_new = jnp.maximum(m_prev, jnp.max(s, axis=-1, keepdims=True))
        alpha = jnp.exp(m_prev - m_new)
        p = jnp.exp(s - m_new)
        l_sc[i] = alpha * l_sc[i] + jnp.sum(p, axis=-1, keepdims=True)
        acc_sc[i] = alpha * acc_sc[i] + jnp.dot(
            p.astype(v_grp.dtype), v_grp[:, sl],
            preferred_element_type=jnp.float32)
        m_sc[i] = m_new

    @pl.when(kv == n_kv - 1)
    def _():
        # Normalize every head of the group and fold the whole group into the
        # output projection with one (Tq, G*hd) @ (G*hd, D) matmul:
        #   attn @ Wo == sum_groups attn_grp @ Wo[group_rows, :]
        heads = []
        for i in range(heads_per_group):
            r = pl.reciprocal(l_sc[i], approx=True)       # EUP slot
            inv_l = r * (2.0 - l_sc[i] * r)               # one Newton refinement
            heads.append(acc_sc[i] * inv_l)
        attn_grp = jnp.concatenate(heads, axis=-1).astype(wo_ref.dtype)
        oproj_sc[...] += jnp.dot(attn_grp, wo_ref[...],
                                 preferred_element_type=jnp.float32)

    @pl.when(jnp.logical_and(g == n_g - 1, kv == n_kv - 1))
    def _():
        attn_out = oproj_sc[...] + bo_ref[...]            # (Tq, D) f32
        # AdapterEraser (rank padded to 128 lanes; padded rows of W_up are 0):
        #   up(gelu(down(attn_out))) + attn_out
        down = jnp.dot(attn_out.astype(wd_ref.dtype), wd_ref[...],
                       preferred_element_type=jnp.float32) + bd_ref[...]
        act = _gelu_exact(down)
        up = jnp.dot(act.astype(wu_ref.dtype), wu_ref[...],
                     preferred_element_type=jnp.float32) + bu_ref[...]
        o_ref[...] = (attn_out + up).astype(o_ref.dtype)


# ---------------------------------------------------------------------------
# Wrapper helpers
# ---------------------------------------------------------------------------
def _heads_per_group(num_heads, head_dim, lane_target):
    """Pack heads so the packed lane width reaches ~lane_target (>=128 where the
    head count allows), while dividing num_heads evenly."""
    g = 1
    for cand in range(1, num_heads + 1):
        if num_heads % cand == 0 and cand * head_dim <= max(lane_target, head_dim):
            g = cand
    # If the chosen group is still narrower than 128 lanes, widen it further so
    # q/k/v DMA stays as lane-dense as the head count allows.
    while g < num_heads and g * head_dim < 128:
        nxt = g + 1
        while num_heads % nxt:
            nxt += 1
        g = nxt
    return g


def _vmem_limit_bytes():
    try:
        cap = int(pltpu.get_tpu_info().vmem_capacity_bytes)
    except Exception:
        cap = 128 * 1024 * 1024          # v5e / v6e physical VMEM
    # Leave headroom for compiler-internal scratch (matters on v7x's 64 MiB).
    return int(cap * 0.7)


def _const_spec(block_shape, index_map, single_buffer):
    """BlockSpec for a constant-index operand; single pipeline buffer when the
    Pallas build supports pipeline_mode=pl.Buffered(1)."""
    if single_buffer:
        try:
            return pl.BlockSpec(block_shape, index_map,
                                pipeline_mode=pl.Buffered(1))
        except Exception:
            pass
    return pl.BlockSpec(block_shape, index_map)


def attention_with_eraser(x, params, *, num_heads, q_tile=512, kv_tile=2048,
                          proj_tile=512, lane_target=128, compute_dtype=None,
                          single_buffer_consts=True):
    """Fused self-attention + AdapterEraser forward (PyTorch module semantics).

    compute_dtype: dtype fed to the MXU for q/k/v and all weights
      (bf16 fast path: compute_dtype=jnp.bfloat16); softmax state and all
      accumulators stay f32.
    lane_target: packed head-group lane width (128 suits v5e, 256 v6e/v7x).
    """
    B, S, D = x.shape
    assert D % num_heads == 0, "embed dim must divide evenly across heads"
    hd = D // num_heads
    out_dtype = x.dtype
    cdt = jnp.dtype(compute_dtype) if compute_dtype is not None else jnp.dtype(x.dtype)
    c_size = cdt.itemsize

    # ---- head packing: group G heads so q/k/v blocks are lane-dense ---------
    G = _heads_per_group(num_heads, hd, lane_target)
    n_groups = num_heads // G
    Ghd = G * hd

    # ---- tiles ---------------------------------------------------------------
    Ts = min(S, proj_tile)
    Tq = min(S, q_tile)
    Tk = min(S, kv_tile)        # whole-KV per step for typical diffusers S
    assert S % Ts == 0 and S % Tq == 0 and S % Tk == 0, \
        "wrapper assumes the sequence length divides the tile sizes"

    # Megacore (v7x): keep both TensorCores busy on the parallel grid axes.
    while B * (S // Tq) < 2 and Tq > 128 and S % (Tq // 2) == 0:
        Tq //= 2

    # ---- packed QKV weight (D, 3D): [Wq | Wk | Wv] along the output dim -----
    w_qkv = jnp.concatenate(
        [params["w_q"], params["w_k"], params["w_v"]], axis=-1).astype(cdt)
    w_o = params["w_o"].astype(cdt)                       # (D, D)
    b_o = params["b_o"].astype(jnp.float32)               # (1, D)

    # ---- pad the eraser rank to a full 128-lane tile (exact: padded rows of
    #      W_up are zero so the padded columns contribute nothing) ------------
    R = params["w_down"].shape[1]
    R_pad = ((R + 127) // 128) * 128
    pr = R_pad - R
    w_down = jnp.pad(params["w_down"], ((0, 0), (0, pr))).astype(cdt)
    b_down = jnp.pad(params["b_down"], ((0, 0), (0, pr))).astype(jnp.float32)
    w_up = jnp.pad(params["w_up"], ((0, pr), (0, 0))).astype(cdt)
    b_up = params["b_up"].astype(jnp.float32)

    x_c = x.astype(cdt)
    vmem_limit = _vmem_limit_bytes()

    # Gate the big-tile choice on the per-generation VMEM budget (v7x: 64 MiB).
    def _flash_vmem(tq, tk):
        nbuf_c = 1 if single_buffer_consts else 2
        pipelined = (2 * (tq * Ghd + 2 * tk * Ghd + Ghd * D) * c_size
                     + 2 * tq * D * jnp.dtype(out_dtype).itemsize)
        consts = nbuf_c * ((2 * D * R_pad) * c_size + (2 * D + R_pad) * 4)
        scratch = (2 * G * tq + G * tq * hd + tq * D) * 4
        return pipelined + consts + scratch

    while _flash_vmem(Tq, Tk) > 0.6 * vmem_limit and Tk > 512 and S % (Tk // 2) == 0:
        Tk //= 2
    while _flash_vmem(Tq, Tk) > 0.6 * vmem_limit and Tq > 128 and S % (Tq // 2) == 0:
        Tq //= 2

    # ------------------------------ fused QKV projection ---------------------
    qkv_cost = pl.CostEstimate(
        flops=int(2 * B * S * D * 3 * D),
        transcendentals=0,
        bytes_accessed=int((4 * B * S * D + 3 * D * D) * c_size),
    )
    q, k, v = pl.pallas_call(
        functools.partial(_qkv_proj_kernel, dim=D),
        out_shape=tuple(jax.ShapeDtypeStruct((B, S, D), cdt) for _ in range(3)),
        grid=(B, S // Ts),
        in_specs=[
            pl.BlockSpec((None, Ts, D), lambda b, s: (b, s, 0)),              # x
            _const_spec((D, 3 * D), lambda b, s: (0, 0), single_buffer_consts),  # W_qkv (resident)
        ],
        out_specs=tuple(
            pl.BlockSpec((None, Ts, D), lambda b, s: (b, s, 0)) for _ in range(3)),
        compiler_params=pltpu.CompilerParams(
            dimension_semantics=("parallel", "parallel"),
            vmem_limit_bytes=vmem_limit),
        cost_estimate=qkv_cost,
    )(x_c, w_qkv)

    # ----------------- flash attention + out-proj + eraser -------------------
    flash_cost = pl.CostEstimate(
        flops=int(B * (4 * S * S * D          # q@k^T and p@v over all heads
                       + 2 * S * D * D        # fused output projection
                       + 4 * S * D * R_pad)), # eraser down + up
        transcendentals=int(B * num_heads * S * S + B * S * R_pad),
        bytes_accessed=int((4 * B * S * D + D * D + 2 * D * R_pad) * c_size
                           + (2 * D + R_pad) * 4),
    )
    const2 = lambda b, qi, g, kv: (0, 0)
    out = pl.pallas_call(
        functools.partial(_flash_eraser_kernel, sm_scale=1.0 / math.sqrt(hd),
                          heads_per_group=G, head_dim=hd),
        out_shape=jax.ShapeDtypeStruct((B, S, D), out_dtype),
        grid=(B, S // Tq, n_groups, S // Tk),
        in_specs=[
            pl.BlockSpec((None, Tq, Ghd), lambda b, qi, g, kv: (b, qi, g)),   # q group
            pl.BlockSpec((None, Tk, Ghd), lambda b, qi, g, kv: (b, kv, g)),   # k group
            pl.BlockSpec((None, Tk, Ghd), lambda b, qi, g, kv: (b, kv, g)),   # v group
            pl.BlockSpec((Ghd, D), lambda b, qi, g, kv: (g, 0)),              # Wo rows of group
            _const_spec((1, D), const2, single_buffer_consts),        # b_o
            _const_spec((D, R_pad), const2, single_buffer_consts),    # W_down (rank padded)
            _const_spec((1, R_pad), const2, single_buffer_consts),    # b_down
            _const_spec((R_pad, D), const2, single_buffer_consts),    # W_up
            _const_spec((1, D), const2, single_buffer_consts),        # b_up
        ],
        out_specs=pl.BlockSpec((None, Tq, D), lambda b, qi, g, kv: (b, qi, 0)),
        scratch_shapes=[
            pltpu.VMEM((G, Tq, 1), jnp.float32),   # running max m (per head in group)
            pltpu.VMEM((G, Tq, 1), jnp.float32),   # running sum l (per head in group)
            pltpu.VMEM((G, Tq, hd), jnp.float32),  # per-head attention accumulator
            pltpu.VMEM((Tq, D), jnp.float32),      # fused out-projection accumulator
        ],
        compiler_params=pltpu.CompilerParams(
            dimension_semantics=("parallel", "parallel", "arbitrary", "arbitrary"),
            vmem_limit_bytes=vmem_limit),
        cost_estimate=flash_cost,
    )(q, k, v, w_o, b_o, w_down, b_down, w_up, b_up)
    return out


def reference(x, params, *, num_heads):
    """Pure-JAX reference matching the PyTorch forward semantics."""
    B, S, D = x.shape
    hd = D // num_heads
    q = x @ params["w_q"]
    k = x @ params["w_k"]
    v = x @ params["w_v"]
    split = lambda t: t.reshape(B, S, num_heads, hd).transpose(0, 2, 1, 3)
    qh, kh, vh = split(q), split(k), split(v)
    s = jnp.einsum("bhqd,bhkd->bhqk", qh, kh) / math.sqrt(hd)
    p = jax.nn.softmax(s, axis=-1)
    o = jnp.einsum("bhqk,bhkd->bhqd", p, vh).transpose(0, 2, 1, 3).reshape(B, S, D)
    attn_out = o @ params["w_o"] + params["b_o"]
    down = attn_out @ params["w_down"] + params["b_down"]
    act = 0.5 * down * (1.0 + jax.lax.erf(down / math.sqrt(2.0)))
    up = act @ params["w_up"] + params["b_up"]
    return up + attn_out


if __name__ == "__main__":
    B, S, D, H, R = 2, 8, 32, 4, 8  # batch, seq, dim, heads, eraser_rank
    key = jax.random.PRNGKey(0)
    ks = jax.random.split(key, 10)

    x = jax.random.normal(ks[0], (B, S, D), jnp.float32)

    params = {
        # attention projections (bias-free q/k/v, biased out-proj, diffusers default)
        "w_q": 0.05 * jax.random.normal(ks[1], (D, D), jnp.float32),
        "w_k": 0.05 * jax.random.normal(ks[2], (D, D), jnp.float32),
        "w_v": 0.05 * jax.random.normal(ks[3], (D, D), jnp.float32),
        "w_o": 0.05 * jax.random.normal(ks[4], (D, D), jnp.float32),
        "b_o": 0.05 * jax.random.normal(ks[5], (1, D), jnp.float32),
        # AdapterEraser: down (dim->rank) normal init, up (rank->dim) zero-init
        "w_down": 0.05 * jax.random.normal(ks[6], (D, R), jnp.float32),
        "b_down": 0.05 * jax.random.normal(ks[7], (1, R), jnp.float32),
        "w_up": jnp.zeros((R, D), jnp.float32),
        "b_up": jnp.zeros((1, D), jnp.float32),
    }

    # pl.Buffered(1) single-buffering of constant operands is a newer Pallas
    # feature; if this build rejects it, retry with default double buffering.
    sbc = True
    try:
        out = jax.block_until_ready(
            attention_with_eraser(x, params, num_heads=H, single_buffer_consts=True))
    except Exception:
        sbc = False
        out = jax.block_until_ready(
            attention_with_eraser(x, params, num_heads=H, single_buffer_consts=False))

    ref = reference(x, params, num_heads=H)
    assert out.shape == (B, S, D)
    assert jnp.allclose(out, ref, atol=5e-3, rtol=5e-3), "mismatch vs JAX reference"

    # Second check with a non-zero up projection so the eraser (down/GELU/up)
    # path itself is exercised numerically (the module zero-inits it, so the
    # first check only validates the attention + residual path).
    params_nz = dict(
        params,
        w_up=0.05 * jax.random.normal(ks[8], (R, D), jnp.float32),
        b_up=0.05 * jax.random.normal(ks[9], (1, D), jnp.float32),
    )
    out_nz = jax.block_until_ready(
        attention_with_eraser(x, params_nz, num_heads=H, single_buffer_consts=sbc))
    ref_nz = reference(x, params_nz, num_heads=H)
    assert jnp.allclose(out_nz, ref_nz, atol=5e-3, rtol=5e-3), "eraser path mismatch"

    print("KERNEL_OK")
</pallas_src>

<mosaic_0001>
module attributes {stable_mosaic.version = 11 : i64} {
  func.func @_qkv_proj_kernel(%arg0: i32, %arg1: i32, %arg2: memref<1x8x32xf32, #tpu.memory_space<vmem>>, %arg3: memref<32x96xf32, #tpu.memory_space<vmem>>, %arg4: memref<1x8x32xf32, #tpu.memory_space<vmem>>, %arg5: memref<1x8x32xf32, #tpu.memory_space<vmem>>, %arg6: memref<1x8x32xf32, #tpu.memory_space<vmem>>) attributes {dimension_semantics = [#tpu.dimension_semantics<parallel>, #tpu.dimension_semantics<parallel>], iteration_bounds = array<i64: 2, 1>, scalar_prefetch = 0 : i64, scratch_operands = 0 : i64, tpu.core_type = #tpu.core_type<tc>, window_params = [{transform_indices = @transform_0, window_bounds = array<i64: 1, 8, 32>}, {pipeline_mode = #tpu.pipeline_mode<synchronous>, transform_indices = @transform_1, window_bounds = array<i64: 32, 96>}, {transform_indices = @transform_2, window_bounds = array<i64: 1, 8, 32>}, {transform_indices = @transform_3, window_bounds = array<i64: 1, 8, 32>}, {transform_indices = @transform_4, window_bounds = array<i64: 1, 8, 32>}]} {
    %c0 = arith.constant 0 : index
    %c0_0 = arith.constant 0 : index
    %c0_1 = arith.constant 0 : index
    %0 = vector.load %arg2[%c0, %c0_0, %c0_1] : memref<1x8x32xf32, #tpu.memory_space<vmem>>, vector<1x8x32xf32>
    %1 = vector.shape_cast %0 : vector<1x8x32xf32> to vector<8x32xf32>
    %c0_2 = arith.constant 0 : index
    %c0_3 = arith.constant 0 : index
    %2 = vector.load %arg3[%c0_2, %c0_3] : memref<32x96xf32, #tpu.memory_space<vmem>>, vector<32x96xf32>
    %cst = arith.constant dense<0.000000e+00> : vector<8x96xf32>
    %3 = tpu.matmul %1, %2, %cst {dimension_numbers = #tpu.dot_dimension_numbers<[1], [0], [0], [1], [0, 0, 1, 1], [], []>} : vector<8x32xf32>, vector<32x96xf32>, vector<8x96xf32> -> vector<8x96xf32>
    %4 = vector.extract_strided_slice %3 {offsets = [0, 0], sizes = [8, 32], strides = [1, 1]} : vector<8x96xf32> to vector<8x32xf32>
    %c0_4 = arith.constant 0 : index
    %c0_5 = arith.constant 0 : index
    %c0_6 = arith.constant 0 : index
    %5 = vector.load %arg4[%c0_4, %c0_5, %c0_6] : memref<1x8x32xf32, #tpu.memory_space<vmem>>, vector<1x8x32xf32>
    %6 = vector.shape_cast %5 : vector<1x8x32xf32> to vector<8x32xf32>
    %7 = vector.shape_cast %4 : vector<8x32xf32> to vector<1x8x32xf32>
    tpu.vector_store %arg4[%c0_4, %c0_5, %c0_6], %7 {strides = array<i32>} : memref<1x8x32xf32, #tpu.memory_space<vmem>>, vector<1x8x32xf32>,
    %8 = vector.extract_strided_slice %3 {offsets = [0, 32], sizes = [8, 32], strides = [1, 1]} : vector<8x96xf32> to vector<8x32xf32>
    %c0_7 = arith.constant 0 : index
    %c0_8 = arith.constant 0 : index
    %c0_9 = arith.constant 0 : index
    %9 = vector.load %arg5[%c0_7, %c0_8, %c0_9] : memref<1x8x32xf32, #tpu.memory_space<vmem>>, vector<1x8x32xf32>
    %10 = vector.shape_cast %9 : vector<1x8x32xf32> to vector<8x32xf32>
    %11 = vector.shape_cast %8 : vector<8x32xf32> to vector<1x8x32xf32>
    tpu.vector_store %arg5[%c0_7, %c0_8, %c0_9], %11 {strides = array<i32>} : memref<1x8x32xf32, #tpu.memory_space<vmem>>, vector<1x8x32xf32>,
    %12 = vector.extract_strided_slice %3 {offsets = [0, 64], sizes = [8, 32], strides = [1, 1]} : vector<8x96xf32> to vector<8x32xf32>
    %c0_10 = arith.constant 0 : index
    %c0_11 = arith.constant 0 : index
    %c0_12 = arith.constant 0 : index
    %13 = vector.load %arg6[%c0_10, %c0_11, %c0_12] : memref<1x8x32xf32, #tpu.memory_space<vmem>>, vector<1x8x32xf32>
    %14 = vector.shape_cast %13 : vector<1x8x32xf32> to vector<8x32xf32>
    %15 = vector.shape_cast %12 : vector<8x32xf32> to vector<1x8x32xf32>
    tpu.vector_store %arg6[%c0_10, %c0_11, %c0_12], %15 {strides = array<i32>} : memref<1x8x32xf32, #tpu.memory_space<vmem>>, vector<1x8x32xf32>,
    return
  }
  func.func @transform_0(%arg0: i32, %arg1: i32) -> (i32, i32, i32) {
    %c0_i32 = arith.constant 0 : i32
    %c0_i32_0 = arith.constant 0 : i32
    return %arg0, %arg1, %c0_i32 : i32, i32, i32
  }
  func.func @transform_1(%arg0: i32, %arg1: i32) -> (i32, i32) {
    %c0_i32 = arith.constant 0 : i32
    %c0_i32_0 = arith.constant 0 : i32
    %c0_i32_1 = arith.constant 0 : i32
    return %c0_i32, %c0_i32_0 : i32, i32
  }
  func.func @transform_2(%arg0: i32, %arg1: i32) -> (i32, i32, i32) {
    %c0_i32 = arith.constant 0 : i32
    %c0_i32_0 = arith.constant 0 : i32
    return %arg0, %arg1, %c0_i32 : i32, i32, i32
  }
  func.func @transform_3(%arg0: i32, %arg1: i32) -> (i32, i32, i32) {
    %c0_i32 = arith.constant 0 : i32
    %c0_i32_0 = arith.constant 0 : i32
    return %arg0, %arg1, %c0_i32 : i32, i32, i32
  }
  func.func @transform_4(%arg0: i32, %arg1: i32) -> (i32, i32, i32) {
    %c0_i32 = arith.constant 0 : i32
    %c0_i32_0 = arith.constant 0 : i32
    return %arg0, %arg1, %c0_i32 : i32, i32, i32
  }
}

module attributes {stable_mosaic.version = 11 : i64} {
  func.func @_qkv_proj_kernel(%arg0: i32, %arg1: i32, %arg2: memref<1x8x32xf32, #tpu.memory_space<vmem>>, %arg3: memref<32x96xf32, #tpu.memory_space<vmem>>, %arg4: memref<1x8x32xf32, #tpu.memory_space<vmem>>, %arg5: memref<1x8x32xf32, #tpu.memory_space<vmem>>, %arg6: memref<1x8x32xf32, #tpu.memory_space<vmem>>) attributes {dimension_semantics = [#tpu.dimension_semantics<parallel>, #tpu.dimension_semantics<parallel>], iteration_bounds = array<i64: 2, 1>, scalar_prefetch = 0 : i64, scratch_operands = 0 : i64, tpu.core_type = #tpu.core_type<tc>, window_params = [{transform_indices = @transform_0, window_bounds = array<i64: 1, 8, 32>}, {pipeline_mode = #tpu.pipeline_mode<synchronous>, transform_indices = @transform_1, window_bounds = array<i64: 32, 96>}, {transform_indices = @transform_2, window_bounds = array<i64: 1, 8, 32>}, {transform_indices = @transform_3, window_bounds = array<i64: 1, 8, 32>}, {transform_indices = @transform_4, window_bounds = array<i64: 1, 8, 32>}]} {
    %c0 = arith.constant 0 : index
    %c0_0 = arith.constant 0 : index
    %c0_1 = arith.constant 0 : index
    %0 = vector.load %arg2[%c0, %c0_0, %c0_1] : memref<1x8x32xf32, #tpu.memory_space<vmem>>, vector<1x8x32xf32>
    %1 = vector.shape_cast %0 : vector<1x8x32xf32> to vector<8x32xf32>
    %c0_2 = arith.constant 0 : index
    %c0_3 = arith.constant 0 : index
    %2 = vector.load %arg3[%c0_2, %c0_3] : memref<32x96xf32, #tpu.memory_space<vmem>>, vector<32x96xf32>
    %cst = arith.constant dense<0.000000e+00> : vector<8x96xf32>
    %3 = tpu.matmul %1, %2, %cst {dimension_numbers = #tpu.dot_dimension_numbers<[1], [0], [0], [1], [0, 0, 1, 1], [], []>} : vector<8x32xf32>, vector<32x96xf32>, vector<8x96xf32> -> vector<8x96xf32>
    %4 = vector.extract_strided_slice %3 {offsets = [0, 0], sizes = [8, 32], strides = [1, 1]} : vector<8x96xf32> to vector<8x32xf32>
    %c0_4 = arith.constant 0 : index
    %c0_5 = arith.constant 0 : index
    %c0_6 = arith.constant 0 : index
    %5 = vector.load %arg4[%c0_4, %c0_5, %c0_6] : memref<1x8x32xf32, #tpu.memory_space<vmem>>, vector<1x8x32xf32>
    %6 = vector.shape_cast %5 : vector<1x8x32xf32> to vector<8x32xf32>
    %7 = vector.shape_cast %4 : vector<8x32xf32> to vector<1x8x32xf32>
    tpu.vector_store %arg4[%c0_4, %c0_5, %c0_6], %7 {strides = array<i32>} : memref<1x8x32xf32, #tpu.memory_space<vmem>>, vector<1x8x32xf32>,
    %8 = vector.extract_strided_slice %3 {offsets = [0, 32], sizes = [8, 32], strides = [1, 1]} : vector<8x96xf32> to vector<8x32xf32>
    %c0_7 = arith.constant 0 : index
    %c0_8 = arith.constant 0 : index
    %c0_9 = arith.constant 0 : index
    %9 = vector.load %arg5[%c0_7, %c0_8, %c0_9] : memref<1x8x32xf32, #tpu.memory_space<vmem>>, vector<1x8x32xf32>
    %10 = vector.shape_cast %9 : vector<1x8x32xf32> to vector<8x32xf32>
    %11 = vector.shape_cast %8 : vector<8x32xf32> to vector<1x8x32xf32>
    tpu.vector_store %arg5[%c0_7, %c0_8, %c0_9], %11 {strides = array<i32>} : memref<1x8x32xf32, #tpu.memory_space<vmem>>, vector<1x8x32xf32>,
    %12 = vector.extract_strided_slice %3 {offsets = [0, 64], sizes = [8, 32], strides = [1, 1]} : vector<8x96xf32> to vector<8x32xf32>
    %c0_10 = arith.constant 0 : index
    %c0_11 = arith.constant 0 : index
    %c0_12 = arith.constant 0 : index
    %13 = vector.load %arg6[%c0_10, %c0_11, %c0_12] : memref<1x8x32xf32, #tpu.memory_space<vmem>>, vector<1x8x32xf32>
    %14 = vector.shape_cast %13 : vector<1x8x32xf32> to vector<8x32xf32>
    %15 = vector.shape_cast %12 : vector<8x32xf32> to vector<1x8x32xf32>
    tpu.vector_store %arg6[%c0_10, %c0_11, %c0_12], %15 {strides = array<i32>} : memref<1x8x32xf32, #tpu.memory_space<vmem>>, vector<1x8x32xf32>,
    return
  }
  func.func @transform_0(%arg0: i32, %arg1: i32) -> (i32, i32, i32) {
    %c0_i32 = arith.constant 0 : i32
    %c0_i32_0 = arith.constant 0 : i32
    return %arg0, %arg1, %c0_i32 : i32, i32, i32
  }
  func.func @transform_1(%arg0: i32, %arg1: i32) -> (i32, i32) {
    %c0_i32 = arith.constant 0 : i32
    %c0_i32_0 = arith.constant 0 : i32
    %c0_i32_1 = arith.constant 0 : i32
    return %c0_i32, %c0_i32_0 : i32, i32
  }
  func.func @transform_2(%arg0: i32, %arg1: i32) -> (i32, i32, i32) {
    %c0_i32 = arith.constant 0 : i32
    %c0_i32_0 = arith.constant 0 : i32
    return %arg0, %arg1, %c0_i32 : i32, i32, i32
  }
  func.func @transform_3(%arg0: i32, %arg1: i32) -> (i32, i32, i32) {
    %c0_i32 = arith.constant 0 : i32
    %c0_i32_0 = arith.constant 0 : i32
    return %arg0, %arg1, %c0_i32 : i32, i32, i32
  }
  func.func @transform_4(%arg0: i32, %arg1: i32) -> (i32, i32, i32) {
    %c0_i32 = arith.constant 0 : i32
    %c0_i32_0 = arith.constant 0 : i32
    return %arg0, %arg1, %c0_i32 : i32, i32, i32
  }
}

</mosaic_0001>

<bundles_post_ra>
// kernel: tpu_custom_call.1
= control target key start
LH: loop header
LB: loop body
LE: loop exit
PB: predicated region body
PF: predicated region fallthrough
CT: control target
= control target key end

     0   :  { %10 = vsyncpa [#allocation3], 0  ;;  %s1062_s0 = inlined_call_operand.hbm [shape: f32[2,8,32], index: 0, kind: input, shape index: {}]   ;;  %s1063_s1 = inlined_call_operand.hbm [shape: f32[32,96], index: 1, kind: input, shape index: {}]   ;;  %s1064_s2 = inlined_call_operand.hbm [shape: f32[2,8,32], index: 2, kind: output, shape index: {0}]   ;;  %s1065_s3 = inlined_call_operand.hbm [shape: f32[2,8,32], index: 3, kind: output, shape index: {1}]   ;;  %s1066_s4 = inlined_call_operand.hbm [shape: f32[2,8,32], index: 4, kind: output, shape index: {2}]  }
   0x1   :  { %12 = vsyncpa [#allocation3 + $0x1], 0 }
   0x2   :  { %13 = vsyncpa [#allocation6], 0 }
   0x3   :  { %14 = vsyncpa [#allocation4], 0 }
   0x4   :  { %16 = vsyncpa [#allocation4 + $0x1], 0 }
   0x5   :  { %17 = vsyncpa [#allocation9], 0 }
   0x6   :  { %19 = vsyncpa [#allocation9 + $0x1], 0  ;;  %s869_s15 = smov 0   ;;  %s871_s16 = smov 0  }
   0x7   :  { %s873_s17 = smov 0   ;;  %s875_s18 = smov 0  }
   0x8   :  { %s877_s19 = smov 0   ;;  %s879_s20 = smov 0  }
   0x9 LB: > { %s900_s21 = sadd.s32 4294967295, %s837_s20   ;;  %p524_p0 = scmp.ge.s32.totalorder %s837_s20, 1  ;;  %s837_s20 = sphi %s879_s20, %s25_s20   ;;  %s833_s19 = sphi %s877_s19, %s1078_s19   ;;  %s829_s18 = sphi %s875_s18, %s1077_s18   ;;  %s825_s17 = sphi %s873_s17, %s1076_s17   ;;  %s821_s16 = sphi %s871_s16, %s1075_s16   ;;  %s817_s15 = sphi %s869_s15, %s1074_s15  }
   0xa   : > { %p60_p1 = scmp.eq.s32.totalorder %s900_s21, 0  ;;  %p175_p2 = scmp.lt.s32.totalorder %s837_s20, 3 }
   0xb   : > { %s186_s24 = sshll.u32 %s1063_s1, 4  ;;  %s839_s26 = smov [#allocation5]   ;;  %s187_s24 = int_to_ptr.hbm [resolvable:$true] %s186_s24 }
   0xc   : > { %p908_p3 = pnand %p524_p0, %p175_p2  ;;  %s188_s27 = sshll.u32 %s839_s26, 4  ;;  %s189_s27 = int_to_ptr.vmem [resolvable:$true] %s188_s27 }
   0xd   : > { %p526_p6 = scmp.ge.s32.totalorder %s837_s20, 2  ;;  %s840_s28 = smov 128  }
   0xe   : > { %p556_p4 = pneg %p908_p3  ;;  %s841_s29 = smov 8  }
   0xf   : > { %s1067_s30 = sadd.s32 4294967294, %s837_s20   ;;  %s37_s5 = sadd.s32 1, %s833_s19 }
  0x10   : > { %p557_p5 = pnand %p556_p4, %p60_p1  ;;  %s46_s6 = sadd.s32 1, %s825_s17 }
  0x11   : > { %p39_p7 = scmp.ge.s32.totalorder %s37_s5, 2  ;;  %p53_p8 = scmp.ne.s32.totalorder %s825_s17, %s821_s16 }
  0x12   : > { %559 = dma.hbm_to_vmem [thread:$0]  (!%p557_p5), %s187_s24, 512, %s189_s27, [#allocation6], %s840_s28, %s840_s28, %s841_s29  }
  0x13   : > { %p54_p9 = scmp.eq.s32.totalorder %s837_s20, 0  ;;  %p59_p10 = scmp.ne.s32.totalorder %s821_s16, %s817_s15 }
  0x14   : > { %s1080_s5 = smov (%p39_p7, %s37_s5), 0  ;;  %p106_p13 = scmp.eq.s32.totalorder %s900_s21, 1 }
  0x15   : > { %p927_p11 = por %p54_p9, %p53_p8  ;;  %p933_p12 = por %p60_p1, %p59_p10 }
  0x16   : > { %s41_s9 = ssub.s32 %s833_s19, %s1080_s5  ;;  %p112_p2 = scmp.eq.s32.totalorder %s1067_s30, 1 }
  0x17   : > { %p44_p0 = scmp.eq.s32.totalorder %s41_s9, 0  ;;  %p942_p4 = por %p106_p13, %p53_p8 }
  0x18   : > { %p575_p5 = scmp.lt.s32.totalorder %s837_s20, 2  ;;  %p950_p7 = por %p112_p2, %p59_p10 }
  0x19   : > { %s948_s11 = scalar_select %p44_p0, %s825_s17, %s46_s6  }
  0x1a   : > { %s202_s13 = sand.u32 1, %s825_s17   ;;  %s528_s22 = sshll.u32 %s833_s19, 3 }
  0x1b   : > { %s527_s14 = sshll.u32 %s202_s13, 3  ;;  %s211_s26 = scalar_lea.hbm %s1062_s0, %s528_s22 }
  0x1c   : > { %s206_s27 = scalar_lea.vmem [#allocation2], %s527_s14  ;;  %s213_s29 = sshll.u32 %s211_s26, 4  ;;  %s214_s29 = int_to_ptr.hbm [resolvable:$true] %s213_s29 }
  0x1d   : > { %s215_s28 = sshll.u32 %s206_s27, 4  ;;  %p561_p8 = pnand %p575_p5, %p927_p11  ;;  %s216_s28 = int_to_ptr.vmem [resolvable:$true] %s215_s28 }
  0x1e   : > { %s203_s6 = scalar_lea.sflag [#allocation3], %s202_s13  ;;  %224 = sbr.rel (%p908_p3) target bundleno = 303 (0x12f), region = 28 }
  0x1f   : > { %563 = dma.hbm_to_vmem [thread:$0]  (!%p561_p8), %s214_s29, 128, %s216_s28, %s203_s6  }
  0x20   : > { %s964_s9 = sand.u32 (!%p908_p3), 1, %s821_s16  }
  0x21   : > { %s967_s23 = sshll.u32 (!%p908_p3), %s964_s9, 3  ;;  %s227_s14 = scalar_lea.sflag (!%p908_p3), [#allocation3], %s964_s9 }
  0x22   : > { %s230_s22 = scalar_lea.vmem (!%p908_p3), [#allocation2], %s967_s23 }
  0x23   : > { %800 = dma.done.wait (%p933_p12), %s227_s14, 128  }
  0x24   : > { %802 = vsyncadd (%p933_p12), %s227_s14, 4294967168 }
  0x25   : > { %804 = dma.done.wait (%p60_p1), [#allocation6], 512  }
  0x26   : > { %806 = vsyncadd (%p60_p1), [#allocation6], 4294966784  ;;  %v275_v0 = vld [vmem:[#allocation5 + $0x18] sm:$0xff]  ;;  %v274_v1 = vld [vmem:[#allocation5 + $0x10] sm:$0xff]  ;;  %vm276_vm0 = vcmask 261120   ;;  %s981_s25 = sshll.u32 %s829_s18, 3 }
  0x27   : > { %292 = vmatpush.msra.mxu0 %v275_v0  ;;  %v273_v2 = vld [vmem:[#allocation5 + $0x8] sm:$0xff]  ;;  %v272_v3 = vld [vmem:[#allocation5] sm:$0xff]  ;;  %v271_v4 = vld [vmem:[%s230_s22] sm:$0xff]  ;;  %s332_s13 = scalar_lea.hbm %s1064_s2, %s981_s25  ;;  %s256_s24 = scalar_lea.vmem [#allocation7], %s967_s23 }
  0x28   : > { %s334_s26 = sshll.u32 %s256_s24, 4  ;;  %s336_s27 = sshll.u32 %s332_s13, 4  ;;  %s335_s26 = int_to_ptr.vmem [resolvable:$true] %s334_s26  ;;  %s337_s27 = int_to_ptr.hbm [resolvable:$true] %s336_s27 }
  0x29   : > { %293 = vmatpush.msra.mxu0 %v274_v1  ;;  %s842_s28 = smov 96   ;;  %s311_s29 = scalar_lea.sflag [#allocation4], %s964_s9 }
  0x2a   : > { %s705_s6 = sshra.s32 %s337_s27, 4  ;;  %s711_s7 = scalar_lea.hbm %s1064_s2, 16  ;;  %s706_s6 = int_to_ptr.hbm [resolvable:$true] %s705_s6 }
  0x2b   : > { %294 = vmatpush.msra.mxu0 %v273_v2  ;;  %s707_s18 = scalar_lea.hbm %s706_s6, 8  ;;  %p712_p10 = scmp.lt.s32.totalorder %s706_s6, %s1064_s2 }
  0x2c   : > { %p708_p1 = scmp.ne.s32.totalorder %s706_s6, %s707_s18  ;;  %p713_p11 = scmp.lt.s32.totalorder %s711_s7, %s707_s18 }
  0x2d   : > { %295 = vmatpush.msra.mxu0 %v272_v3 }
  0x2e   : > { %535 = vmatmul.msk.f32.vlgmr.msra.gmra.mxu0 %vm276_vm0, %v271_v4  ;;  %p709_p3 = pnand %p708_p1, %p942_p4  ;;  %p714_p12 = por %p713_p11, %p712_p10 }
  0x30   : > { %p710_p9 = pneg %p709_p3 }
  0x32   : > { %p715_p13 = pnand %p714_p12, %p710_p9 }
  0xab   : > { %v297_v5 = vpop.f32.mrf.mxu0 }
  0xac   : > { %300 = vst.msk [vmem:[%s256_s24] sm:$0xff] %vm276_vm0, %v297_v5  ;;  %302 = vrot.lane.b32.xlu0 %v297_v5, %s842_s28 }
  0xad   : > { %718 = shalt.err (!%p715_p13)
}
  0xae   : > { %550 = dma.vmem_to_hbm [thread:$0]  (%p942_p4), %s335_s26, 128, %s337_s27, %s311_s29  }
  0xaf   : > { %s843_s9 = smov 64   ;;  %s347_s14 = scalar_lea.hbm %s1065_s3, %s981_s25 }
  0xb0   : > { %s315_s22 = sand.u32 1, %s900_s21   ;;  %s263_s6 = scalar_lea.vmem [#allocation8], %s967_s23 }
  0xb1   : > { %s349_s18 = sshll.u32 %s263_s6, 4  ;;  %s351_s7 = sshll.u32 %s347_s14, 4  ;;  %s350_s18 = int_to_ptr.vmem [resolvable:$true] %s349_s18  ;;  %s352_s7 = int_to_ptr.hbm [resolvable:$true] %s351_s7 }
  0xb2   : > { %s362_s26 = scalar_lea.hbm %s1066_s4, %s981_s25  ;;  %s1011_s27 = scalar_lea.sflag [#allocation9], %s315_s22 }
  0xb3   : > { %s733_s29 = sshra.s32 %s352_s7, 4  ;;  %s739_s28 = scalar_lea.hbm %s1065_s3, 16  ;;  %s734_s29 = int_to_ptr.hbm [resolvable:$true] %s733_s29 }
  0xb4   : > { %306 = vrot.lane.b32.xlu0 %v297_v5, %s843_s9  ;;  %s735_s9 = scalar_lea.hbm %s734_s29, 8  ;;  %p740_p8 = scmp.lt.s32.totalorder %s734_s29, %s1065_s3 }
  0xb5   : > { %p736_p0 = scmp.ne.s32.totalorder %s734_s29, %s735_s9  ;;  %p741_p1 = scmp.lt.s32.totalorder %s739_s28, %s735_s9 }
  0xb7   : > { %p737_p2 = pnand %p736_p0, %p942_p4  ;;  %p742_p3 = por %p741_p1, %p740_p8 }
  0xb9   : > { %p738_p5 = pneg %p737_p2 }
  0xbb   : > { %p743_p9 = pnand %p742_p3, %p738_p5 }
 0x11e   : > { %v303_v6 = vpop.permute.xlu0 %302 }
 0x11f   : > { %305 = vst.msk [vmem:[%s263_s6] sm:$0xff] %vm276_vm0, %v303_v6 }
 0x120   : > { %746 = shalt.err (!%p743_p9)
}
 0x121   : > { %551 = dma.vmem_to_hbm [thread:$0]  (%p942_p4), %s350_s18, 128, %s352_s7, %s1011_s27  }
 0x122   : > { %s270_s25 = scalar_lea.vmem [#allocation10], %s967_s23  ;;  %s366_s6 = sshll.u32 %s362_s26, 4  ;;  %s367_s6 = int_to_ptr.hbm [resolvable:$true] %s366_s6 }
 0x123   : > { %s364_s22 = sshll.u32 %s270_s25, 4  ;;  %s761_s30 = sshra.s32 %s367_s6, 4  ;;  %s365_s22 = int_to_ptr.vmem [resolvable:$true] %s364_s22  ;;  %s762_s30 = int_to_ptr.hbm [resolvable:$true] %s761_s30 }
 0x124   : > { %s763_s8 = scalar_lea.hbm %s762_s30, 8  ;;  %s767_s9 = scalar_lea.hbm %s1066_s4, 16 }
 0x125   : > { %p764_p10 = scmp.ne.s32.totalorder %s762_s30, %s763_s8  ;;  %p768_p13 = scmp.lt.s32.totalorder %s762_s30, %s1066_s4 }
 0x126   : > { %v307_v7 = vpop.permute.xlu0 %306  ;;  %p769_p0 = scmp.lt.s32.totalorder %s767_s9, %s763_s8 }
 0x127   : > { %309 = vst.msk [vmem:[%s270_s25] sm:$0xff] %vm276_vm0, %v307_v7  ;;  %p765_p11 = pnand %p764_p10, %p942_p4 }
 0x128   : > { %p770_p2 = por %p769_p0, %p768_p13 }
 0x129   : > { %p766_p12 = pneg %p765_p11 }
 0x12b   : > { %p771_p5 = pnand %p770_p2, %p766_p12 }
 0x12d   : > { %774 = shalt.err (!%p771_p5)
}
 0x12e   : > { %552 = dma.vmem_to_hbm [thread:$0]  (%p942_p4), %s365_s22, 128, %s367_s6, %s1011_s27  }
 0x12f PF: > { %s378_s7 = sand.u32 1, %s817_s15   ;;  %p565_p8 = pnand %p526_p6, %p950_p7 }
 0x130   : > { %s379_s26 = scalar_lea.sflag [#allocation4], %s378_s7 }
 0x131   : > { %p566_p1 = pneg %p565_p8 }
 0x133   : > { %808 = dma.done.wait (%p566_p1), %s379_s26, 128  }
 0x134   : > { %810 = vsyncadd (%p566_p1), %s379_s26, 4294967168  ;;  %s1073_s21 = sadd.s32 4294967294, %s837_s20  }
 0x135   : > { %s388_s24 = sand.u32 1, %s1073_s21  }
 0x136   : > { %s389_s28 = scalar_lea.sflag [#allocation9], %s388_s24 }
 0x137   : > { %812 = dma.done.wait (%p566_p1), %s389_s28, 256  }
 0x138   : > { %814 = vsyncadd (%p566_p1), %s389_s28, 4294967040  ;;  %s25_s20 = sadd.s32 1, %s837_s20   ;;  %s1074_s15 = smov %s821_s16 }
 0x139   : > { %p22_p4 = scmp.ge.s32.totalorder %s25_s20, 4   ;;  %s1075_s16 = smov %s825_s17 }
 0x13a   : > { %s1076_s17 = smov %s948_s11  ;;  %s1077_s18 = smov %s833_s19 }
 0x13b   : > { %s1078_s19 = smov %s1080_s5  ;;  %24 = sbr.rel (!%p22_p4) target bundleno = 9 (0x9), region = 109 }
 0x140   :  { %405 = vsyncpa [#allocation3], 1 }
 0x141   :  { %407 = vsyncpa [#allocation3 + $0x1], 1 }
 0x142   :  { %408 = vsyncpa [#allocation6], 1 }
 0x143   :  { %409 = vsyncpa [#allocation4], 1 }
 0x144   :  { %411 = vsyncpa [#allocation4 + $0x1], 1 }
 0x145   :  { %412 = vsyncpa [#allocation9], 1 }
 0x146   :  { %414 = vsyncpa [#allocation9 + $0x1], 1 }

// kernel: tpu_custom_call.1
= control target key start
LH: loop header
LB: loop body
LE: loop exit
PB: predicated region body
PF: predicated region fallthrough
CT: control target
= control target key end

     0   :  { %10 = vsyncpa [#allocation3], 0  ;;  %s1062_s0 = inlined_call_operand.hbm [shape: f32[2,8,32], index: 0, kind: input, shape index: {}]   ;;  %s1063_s1 = inlined_call_operand.hbm [shape: f32[32,96], index: 1, kind: input, shape index: {}]   ;;  %s1064_s2 = inlined_call_operand.hbm [shape: f32[2,8,32], index: 2, kind: output, shape index: {0}]   ;;  %s1065_s3 = inlined_call_operand.hbm [shape: f32[2,8,32], index: 3, kind: output, shape index: {1}]   ;;  %s1066_s4 = inlined_call_operand.hbm [shape: f32[2,8,32], index: 4, kind: output, shape index: {2}]  }
   0x1   :  { %12 = vsyncpa [#allocation3 + $0x1], 0 }
   0x2   :  { %13 = vsyncpa [#allocation6], 0 }
   0x3   :  { %14 = vsyncpa [#allocation4], 0 }
   0x4   :  { %16 = vsyncpa [#allocation4 + $0x1], 0 }
   0x5   :  { %17 = vsyncpa [#allocation9], 0 }
   0x6   :  { %19 = vsyncpa [#allocation9 + $0x1], 0  ;;  %s869_s15 = smov 0   ;;  %s871_s16 = smov 0  }
   0x7   :  { %s873_s17 = smov 0   ;;  %s875_s18 = smov 0  }
   0x8   :  { %s877_s19 = smov 0   ;;  %s879_s20 = smov 0  }
   0x9 LB: > { %s900_s21 = sadd.s32 4294967295, %s837_s20   ;;  %p524_p0 = scmp.ge.s32.totalorder %s837_s20, 1  ;;  %s837_s20 = sphi %s879_s20, %s25_s20   ;;  %s833_s19 = sphi %s877_s19, %s1078_s19   ;;  %s829_s18 = sphi %s875_s18, %s1077_s18   ;;  %s825_s17 = sphi %s873_s17, %s1076_s17   ;;  %s821_s16 = sphi %s871_s16, %s1075_s16   ;;  %s817_s15 = sphi %s869_s15, %s1074_s15  }
   0xa   : > { %p60_p1 = scmp.eq.s32.totalorder %s900_s21, 0  ;;  %p175_p2 = scmp.lt.s32.totalorder %s837_s20, 3 }
   0xb   : > { %s186_s24 = sshll.u32 %s1063_s1, 4  ;;  %s839_s26 = smov [#allocation5]   ;;  %s187_s24 = int_to_ptr.hbm [resolvable:$true] %s186_s24 }
   0xc   : > { %p908_p3 = pnand %p524_p0, %p175_p2  ;;  %s188_s27 = sshll.u32 %s839_s26, 4  ;;  %s189_s27 = int_to_ptr.vmem [resolvable:$true] %s188_s27 }
   0xd   : > { %p526_p6 = scmp.ge.s32.totalorder %s837_s20, 2  ;;  %s840_s28 = smov 128  }
   0xe   : > { %p556_p4 = pneg %p908_p3  ;;  %s841_s29 = smov 8  }
   0xf   : > { %s1067_s30 = sadd.s32 4294967294, %s837_s20   ;;  %s37_s5 = sadd.s32 1, %s833_s19 }
  0x10   : > { %p557_p5 = pnand %p556_p4, %p60_p1  ;;  %s46_s6 = sadd.s32 1, %s825_s17 }
  0x11   : > { %p39_p7 = scmp.ge.s32.totalorder %s37_s5, 2  ;;  %p53_p8 = scmp.ne.s32.totalorder %s825_s17, %s821_s16 }
  0x12   : > { %559 = dma.hbm_to_vmem [thread:$0]  (!%p557_p5), %s187_s24, 512, %s189_s27, [#allocation6], %s840_s28, %s840_s28, %s841_s29  }
  0x13   : > { %p54_p9 = scmp.eq.s32.totalorder %s837_s20, 0  ;;  %p59_p10 = scmp.ne.s32.totalorder %s821_s16, %s817_s15 }
  0x14   : > { %s1080_s5 = smov (%p39_p7, %s37_s5), 0  ;;  %p106_p13 = scmp.eq.s32.totalorder %s900_s21, 1 }
  0x15   : > { %p927_p11 = por %p54_p9, %p53_p8  ;;  %p933_p12 = por %p60_p1, %p59_p10 }
  0x16   : > { %s41_s9 = ssub.s32 %s833_s19, %s1080_s5  ;;  %p112_p2 = scmp.eq.s32.totalorder %s1067_s30, 1 }
  0x17   : > { %p44_p0 = scmp.eq.s32.totalorder %s41_s9, 0  ;;  %p942_p4 = por %p106_p13, %p53_p8 }
  0x18   : > { %p575_p5 = scmp.lt.s32.totalorder %s837_s20, 2  ;;  %p950_p7 = por %p112_p2, %p59_p10 }
  0x19   : > { %s948_s11 = scalar_select %p44_p0, %s825_s17, %s46_s6  }
  0x1a   : > { %s202_s13 = sand.u32 1, %s825_s17   ;;  %s528_s22 = sshll.u32 %s833_s19, 3 }
  0x1b   : > { %s527_s14 = sshll.u32 %s202_s13, 3  ;;  %s211_s26 = scalar_lea.hbm %s1062_s0, %s528_s22 }
  0x1c   : > { %s206_s27 = scalar_lea.vmem [#allocation2], %s527_s14  ;;  %s213_s29 = sshll.u32 %s211_s26, 4  ;;  %s214_s29 = int_to_ptr.hbm [resolvable:$true] %s213_s29 }
  0x1d   : > { %s215_s28 = sshll.u32 %s206_s27, 4  ;;  %p561_p8 = pnand %p575_p5, %p927_p11  ;;  %s216_s28 = int_to_ptr.vmem [resolvable:$true] %s215_s28 }
  0x1e   : > { %s203_s6 = scalar_lea.sflag [#allocation3], %s202_s13  ;;  %224 = sbr.rel (%p908_p3) target bundleno = 303 (0x12f), region = 28 }
  0x1f   : > { %563 = dma.hbm_to_vmem [thread:$0]  (!%p561_p8), %s214_s29, 128, %s216_s28, %s203_s6  }
  0x20   : > { %s964_s9 = sand.u32 (!%p908_p3), 1, %s821_s16  }
  0x21   : > { %s967_s23 = sshll.u32 (!%p908_p3), %s964_s9, 3  ;;  %s227_s14 = scalar_lea.sflag (!%p908_p3), [#allocation3], %s964_s9 }
  0x22   : > { %s230_s22 = scalar_lea.vmem (!%p908_p3), [#allocation2], %s967_s23 }
  0x23   : > { %800 = dma.done.wait (%p933_p12), %s227_s14, 128  }
  0x24   : > { %802 = vsyncadd (%p933_p12), %s227_s14, 4294967168 }
  0x25   : > { %804 = dma.done.wait (%p60_p1), [#allocation6], 512  }
  0x26   : > { %806 = vsyncadd (%p60_p1), [#allocation6], 4294966784  ;;  %v275_v0 = vld [vmem:[#allocation5 + $0x18] sm:$0xff]  ;;  %v274_v1 = vld [vmem:[#allocation5 + $0x10] sm:$0xff]  ;;  %vm276_vm0 = vcmask 261120   ;;  %s981_s25 = sshll.u32 %s829_s18, 3 }
  0x27   : > { %292 = vmatpush.msra.mxu0 %v275_v0  ;;  %v273_v2 = vld [vmem:[#allocation5 + $0x8] sm:$0xff]  ;;  %v272_v3 = vld [vmem:[#allocation5] sm:$0xff]  ;;  %v271_v4 = vld [vmem:[%s230_s22] sm:$0xff]  ;;  %s332_s13 = scalar_lea.hbm %s1064_s2, %s981_s25  ;;  %s256_s24 = scalar_lea.vmem [#allocation7], %s967_s23 }
  0x28   : > { %s334_s26 = sshll.u32 %s256_s24, 4  ;;  %s336_s27 = sshll.u32 %s332_s13, 4  ;;  %s335_s26 = int_to_ptr.vmem [resolvable:$true] %s334_s26  ;;  %s337_s27 = int_to_ptr.hbm [resolvable:$true] %s336_s27 }
  0x29   : > { %293 = vmatpush.msra.mxu0 %v274_v1  ;;  %s842_s28 = smov 96   ;;  %s311_s29 = scalar_lea.sflag [#allocation4], %s964_s9 }
  0x2a   : > { %s705_s6 = sshra.s32 %s337_s27, 4  ;;  %s711_s7 = scalar_lea.hbm %s1064_s2, 16  ;;  %s706_s6 = int_to_ptr.hbm [resolvable:$true] %s705_s6 }
  0x2b   : > { %294 = vmatpush.msra.mxu0 %v273_v2  ;;  %s707_s18 = scalar_lea.hbm %s706_s6, 8  ;;  %p712_p10 = scmp.lt.s32.totalorder %s706_s6, %s1064_s2 }
  0x2c   : > { %p708_p1 = scmp.ne.s32.totalorder %s706_s6, %s707_s18  ;;  %p713_p11 = scmp.lt.s32.totalorder %s711_s7, %s707_s18 }
  0x2d   : > { %295 = vmatpush.msra.mxu0 %v272_v3 }
  0x2e   : > { %535 = vmatmul.msk.f32.vlgmr.msra.gmra.mxu0 %vm276_vm0, %v271_v4  ;;  %p709_p3 = pnand %p708_p1, %p942_p4  ;;  %p714_p12 = por %p713_p11, %p712_p10 }
  0x30   : > { %p710_p9 = pneg %p709_p3 }
  0x32   : > { %p715_p13 = pnand %p714_p12, %p710_p9 }
  0xab   : > { %v297_v5 = vpop.f32.mrf.mxu0 }
  0xac   : > { %300 = vst.msk [vmem:[%s256_s24] sm:$0xff] %vm276_vm0, %v297_v5  ;;  %302 = vrot.lane.b32.xlu0 %v297_v5, %s842_s28 }
  0xad   : > { %718 = shalt.err (!%p715_p13)
}
  0xae   : > { %550 = dma.vmem_to_hbm [thread:$0]  (%p942_p4), %s335_s26, 128, %s337_s27, %s311_s29  }
  0xaf   : > { %s843_s9 = smov 64   ;;  %s347_s14 = scalar_lea.hbm %s1065_s3, %s981_s25 }
  0xb0   : > { %s315_s22 = sand.u32 1, %s900_s21   ;;  %s263_s6 = scalar_lea.vmem [#allocation8], %s967_s23 }
  0xb1   : > { %s349_s18 = sshll.u32 %s263_s6, 4  ;;  %s351_s7 = sshll.u32 %s347_s14, 4  ;;  %s350_s18 = int_to_ptr.vmem [resolvable:$true] %s349_s18  ;;  %s352_s7 = int_to_ptr.hbm [resolvable:$true] %s351_s7 }
  0xb2   : > { %s362_s26 = scalar_lea.hbm %s1066_s4, %s981_s25  ;;  %s1011_s27 = scalar_lea.sflag [#allocation9], %s315_s22 }
  0xb3   : > { %s733_s29 = sshra.s32 %s352_s7, 4  ;;  %s739_s28 = scalar_lea.hbm %s1065_s3, 16  ;;  %s734_s29 = int_to_ptr.hbm [resolvable:$true] %s733_s29 }
  0xb4   : > { %306 = vrot.lane.b32.xlu0 %v297_v5, %s843_s9  ;;  %s735_s9 = scalar_lea.hbm %s734_s29, 8  ;;  %p740_p8 = scmp.lt.s32.totalorder %s734_s29, %s1065_s3 }
  0xb5   : > { %p736_p0 = scmp.ne.s32.totalorder %s734_s29, %s735_s9  ;;  %p741_p1 = scmp.lt.s32.totalorder %s739_s28, %s735_s9 }
  0xb7   : > { %p737_p2 = pnand %p736_p0, %p942_p4  ;;  %p742_p3 = por %p741_p1, %p740_p8 }
  0xb9   : > { %p738_p5 = pneg %p737_p2 }
  0xbb   : > { %p743_p9 = pnand %p742_p3, %p738_p5 }
 0x11e   : > { %v303_v6 = vpop.permute.xlu0 %302 }
 0x11f   : > { %305 = vst.msk [vmem:[%s263_s6] sm:$0xff] %vm276_vm0, %v303_v6 }
 0x120   : > { %746 = shalt.err (!%p743_p9)
}
 0x121   : > { %551 = dma.vmem_to_hbm [thread:$0]  (%p942_p4), %s350_s18, 128, %s352_s7, %s1011_s27  }
 0x122   : > { %s270_s25 = scalar_lea.vmem [#allocation10], %s967_s23  ;;  %s366_s6 = sshll.u32 %s362_s26, 4  ;;  %s367_s6 = int_to_ptr.hbm [resolvable:$true] %s366_s6 }
 0x123   : > { %s364_s22 = sshll.u32 %s270_s25, 4  ;;  %s761_s30 = sshra.s32 %s367_s6, 4  ;;  %s365_s22 = int_to_ptr.vmem [resolvable:$true] %s364_s22  ;;  %s762_s30 = int_to_ptr.hbm [resolvable:$true] %s761_s30 }
 0x124   : > { %s763_s8 = scalar_lea.hbm %s762_s30, 8  ;;  %s767_s9 = scalar_lea.hbm %s1066_s4, 16 }
 0x125   : > { %p764_p10 = scmp.ne.s32.totalorder %s762_s30, %s763_s8  ;;  %p768_p13 = scmp.lt.s32.totalorder %s762_s30, %s1066_s4 }
 0x126   : > { %v307_v7 = vpop.permute.xlu0 %306  ;;  %p769_p0 = scmp.lt.s32.totalorder %s767_s9, %s763_s8 }
 0x127   : > { %309 = vst.msk [vmem:[%s270_s25] sm:$0xff] %vm276_vm0, %v307_v7  ;;  %p765_p11 = pnand %p764_p10, %p942_p4 }
 0x128   : > { %p770_p2 = por %p769_p0, %p768_p13 }
 0x129   : > { %p766_p12 = pneg %p765_p11 }
 0x12b   : > { %p771_p5 = pnand %p770_p2, %p766_p12 }
 0x12d   : > { %774 = shalt.err (!%p771_p5)
}
 0x12e   : > { %552 = dma.vmem_to_hbm [thread:$0]  (%p942_p4), %s365_s22, 128, %s367_s6, %s1011_s27  }
 0x12f PF: > { %s378_s7 = sand.u32 1, %s817_s15   ;;  %p565_p8 = pnand %p526_p6, %p950_p7 }
 0x130   : > { %s379_s26 = scalar_lea.sflag [#allocation4], %s378_s7 }
 0x131   : > { %p566_p1 = pneg %p565_p8 }
 0x133   : > { %808 = dma.done.wait (%p566_p1), %s379_s26, 128  }
 0x134   : > { %810 = vsyncadd (%p566_p1), %s379_s26, 4294967168  ;;  %s1073_s21 = sadd.s32 4294967294, %s837_s20  }
 0x135   : > { %s388_s24 = sand.u32 1, %s1073_s21  }
 0x136   : > { %s389_s28 = scalar_lea.sflag [#allocation9], %s388_s24 }
 0x137   : > { %812 = dma.done.wait (%p566_p1), %s389_s28, 256  }
 0x138   : > { %814 = vsyncadd (%p566_p1), %s389_s28, 4294967040  ;;  %s25_s20 = sadd.s32 1, %s837_s20   ;;  %s1074_s15 = smov %s821_s16 }
 0x139   : > { %p22_p4 = scmp.ge.s32.totalorder %s25_s20, 4   ;;  %s1075_s16 = smov %s825_s17 }
 0x13a   : > { %s1076_s17 = smov %s948_s11  ;;  %s1077_s18 = smov %s833_s19 }
 0x13b   : > { %s1078_s19 = smov %s1080_s5  ;;  %24 = sbr.rel (!%p22_p4) target bundleno = 9 (0x9), region = 109 }
 0x140   :  { %405 = vsyncpa [#allocation3], 1 }
 0x141   :  { %407 = vsyncpa [#allocation3 + $0x1], 1 }
 0x142   :  { %408 = vsyncpa [#allocation6], 1 }
 0x143   :  { %409 = vsyncpa [#allocation4], 1 }
 0x144   :  { %411 = vsyncpa [#allocation4 + $0x1], 1 }
 0x145   :  { %412 = vsyncpa [#allocation9], 1 }
 0x146   :  { %414 = vsyncpa [#allocation9 + $0x1], 1 }

</bundles_post_ra>
